<compile_context>
chip_gen: v7x
topology: tpu7x:2x2x1
jax: 0.10.0
libtpu: 0.0.40
codegen_flags: <defaults>
</compile_context>

<pallas_src>
import math

import jax
import jax.numpy as jnp
import numpy as np
from jax import lax
from jax.experimental import pallas as pl
from jax.experimental.pallas import tpu as pltpu


# ----------------------------------------------------------------------------
# VMEM budgeting helpers (per-generation caps)
# ----------------------------------------------------------------------------
def _tpu_vmem_bytes():
    try:
        info = pltpu.get_tpu_info()
        phys = int(getattr(info, "vmem_capacity_bytes", 0) or 0)
        if phys > 0:
            return phys
    except Exception:
        pass
    return 64 << 20  # conservative default (v7x-sized)


def _vmem_limit_bytes(needed):
    """Pick vmem_limit_bytes: prefer ~65% of physical VMEM, allow up to
    physical - 8MiB if a single step genuinely needs more."""
    phys = _tpu_vmem_bytes()
    soft_cap = int(phys * 0.65)          # ~83 MiB on 128 MiB chips, ~41 MiB on v7x
    hard_cap = max(phys - (8 << 20), 16 << 20)
    want = max(int(needed * 1.25), 16 << 20)
    if want <= soft_cap:
        return int(want)
    return int(min(want, hard_cap))


def _pick_tile(dim, preferred, align):
    """Largest tile <= preferred that is an `align`-aligned divisor of dim;
    otherwise the full dim (full-extent blocks always satisfy (8,128))."""
    if dim <= preferred:
        return dim
    start = preferred - (preferred % align)
    for t in range(start, align - 1, -align):
        if t > 0 and dim % t == 0:
            return t
    # TODO(synk): pad to an aligned tile (or use pl.cdiv grids + masking) for
    # awkward dims instead of a full-extent fallback block.
    return dim


# ----------------------------------------------------------------------------
# Kernel 1: tiled matmul with K-axis accumulation (separate projections, out proj)
# ----------------------------------------------------------------------------
def _matmul_kernel(x_ref, w_ref, o_ref, acc_ref):
    @pl.when(pl.program_id(2) == 0)
    def _init():
        acc_ref[...] = jnp.zeros_like(acc_ref)

    acc_ref[...] += jnp.dot(x_ref[...], w_ref[...],
                            preferred_element_type=jnp.float32)

    @pl.when(pl.program_id(2) == pl.num_programs(2) - 1)
    def _finalize():
        o_ref[...] = acc_ref[...].astype(o_ref.dtype)


def pallas_matmul(x, w, *, out_dtype=None, tm=512, tn=512, tk=512):
    """x: (M, K), w: (K, N) -> (M, N). Pipelined, K-accumulated, megacore-friendly."""
    M, K = x.shape
    K2, N = w.shape
    assert K == K2
    if out_dtype is None:
        out_dtype = x.dtype
    tm = _pick_tile(M, tm, 8)
    tn = _pick_tile(N, tn, 128)
    tk = _pick_tile(K, tk, 128)
    grid = (M // tm, N // tn, K // tk)

    in_b = jnp.dtype(x.dtype).itemsize
    out_b = jnp.dtype(out_dtype).itemsize
    needed = 2 * (tm * tk + tk * tn) * in_b + 2 * tm * tn * out_b + tm * tn * 4

    return pl.pallas_call(
        _matmul_kernel,
        out_shape=jax.ShapeDtypeStruct((M, N), out_dtype),
        grid=grid,
        in_specs=[
            pl.BlockSpec((tm, tk), lambda i, j, k: (i, k)),
            pl.BlockSpec((tk, tn), lambda i, j, k: (k, j)),
        ],
        out_specs=pl.BlockSpec((tm, tn), lambda i, j, k: (i, j)),
        scratch_shapes=[pltpu.VMEM((tm, tn), jnp.float32)],
        compiler_params=pltpu.CompilerParams(
            dimension_semantics=("parallel", "parallel", "arbitrary"),
            vmem_limit_bytes=_vmem_limit_bytes(needed),
        ),
    )(x, w)


# ----------------------------------------------------------------------------
# Kernel 2: fused self-attention QKV projection — one x read, three outputs
# ----------------------------------------------------------------------------
def _fused_qkv_kernel(x_ref, wq_ref, wk_ref, wv_ref,
                      q_ref, k_ref, v_ref,
                      accq_ref, acck_ref, accv_ref):
    kk = pl.program_id(1)

    @pl.when(kk == 0)
    def _init():
        accq_ref[...] = jnp.zeros_like(accq_ref)
        acck_ref[...] = jnp.zeros_like(acck_ref)
        accv_ref[...] = jnp.zeros_like(accv_ref)

    x = x_ref[...]
    accq_ref[...] += jnp.dot(x, wq_ref[...], preferred_element_type=jnp.float32)
    acck_ref[...] += jnp.dot(x, wk_ref[...], preferred_element_type=jnp.float32)
    accv_ref[...] += jnp.dot(x, wv_ref[...], preferred_element_type=jnp.float32)

    @pl.when(kk == pl.num_programs(1) - 1)
    def _finalize():
        q_ref[...] = accq_ref[...].astype(q_ref.dtype)
        k_ref[...] = acck_ref[...].astype(k_ref.dtype)
        v_ref[...] = accv_ref[...].astype(v_ref.dtype)


def pallas_fused_qkv(x, w_q, w_k, w_v, *, out_dtype, tm=512, tk=512):
    """x: (M, K); w_*: (K, N_*) -> (q, k, v) = (M, N_q), (M, N_k), (M, N_v)."""
    M, K = x.shape
    Nq, Nk, Nv = w_q.shape[1], w_k.shape[1], w_v.shape[1]
    tm = _pick_tile(M, tm, 8)
    tk = _pick_tile(K, tk, 128)
    grid = (M // tm, K // tk)

    in_b = jnp.dtype(x.dtype).itemsize
    out_b = jnp.dtype(out_dtype).itemsize
    needed = (2 * (tm * tk + tk * (Nq + Nk + Nv)) * in_b
              + 2 * tm * (Nq + Nk + Nv) * out_b
              + tm * (Nq + Nk + Nv) * 4)

    return pl.pallas_call(
        _fused_qkv_kernel,
        out_shape=(jax.ShapeDtypeStruct((M, Nq), out_dtype),
                   jax.ShapeDtypeStruct((M, Nk), out_dtype),
                   jax.ShapeDtypeStruct((M, Nv), out_dtype)),
        grid=grid,
        in_specs=[
            pl.BlockSpec((tm, tk), lambda i, k: (i, k)),
            pl.BlockSpec((tk, Nq), lambda i, k: (k, 0)),
            pl.BlockSpec((tk, Nk), lambda i, k: (k, 0)),
            pl.BlockSpec((tk, Nv), lambda i, k: (k, 0)),
        ],
        out_specs=(pl.BlockSpec((tm, Nq), lambda i, k: (i, 0)),
                   pl.BlockSpec((tm, Nk), lambda i, k: (i, 0)),
                   pl.BlockSpec((tm, Nv), lambda i, k: (i, 0))),
        scratch_shapes=[pltpu.VMEM((tm, Nq), jnp.float32),
                        pltpu.VMEM((tm, Nk), jnp.float32),
                        pltpu.VMEM((tm, Nv), jnp.float32)],
        compiler_params=pltpu.CompilerParams(
            dimension_semantics=("parallel", "arbitrary"),
            vmem_limit_bytes=_vmem_limit_bytes(needed),
        ),
    )(x, w_q, w_k, w_v)


# ----------------------------------------------------------------------------
# Kernel 3: flash-style scaled dot-product attention
#   grid = (bs, q_tiles, kv_tiles); all heads of one q-tile handled per step,
#   heads live in the lane dimension (no (bs, head, len, dim) transposes).
# ----------------------------------------------------------------------------
def _make_flash_kernel(*, head, d_k, d_v, scale, has_mask):
    def kernel(*refs):
        if has_mask:
            q_ref, k_ref, v_ref, mask_ref, o_ref, m_sc, l_sc, acc_sc = refs
        else:
            q_ref, k_ref, v_ref, o_ref, m_sc, l_sc, acc_sc = refs
            mask_ref = None

        ki = pl.program_id(2)

        @pl.when(ki == 0)
        def _init():
            m_sc[...] = jnp.full_like(m_sc, -jnp.inf)
            l_sc[...] = jnp.zeros_like(l_sc)
            acc_sc[...] = jnp.zeros_like(acc_sc)

        # fold 1/sqrt(d_k) into q once (all heads at once), not per score block
        q_all = q_ref[0] * scale              # (tq, head*d_k), compute dtype
        k_all = k_ref[0]                      # (tk, head*d_k)
        v_all = v_ref[0]                      # (tk, head*d_v)
        if has_mask:
            keep = mask_ref[0] > 0            # (tq, tk) bool, hoisted out of head loop

        for h in range(head):                 # unrolled at trace time
            qh = q_all[:, h * d_k:(h + 1) * d_k]
            kh = k_all[:, h * d_k:(h + 1) * d_k]
            vh = v_all[:, h * d_v:(h + 1) * d_v]

            # q @ k^T without materializing k.T (trans_b-style dot_general)
            s = lax.dot_general(qh, kh, (((1,), (1,)), ((), ())),
                                preferred_element_type=jnp.float32)
            if has_mask:
                s = jnp.where(keep, s, -1e9)

            m_prev = m_sc[h]                                   # (tq, 1)
            m_new = jnp.maximum(m_prev, jnp.max(s, axis=-1, keepdims=True))
            alpha = jnp.exp(m_prev - m_new)
            p = jnp.exp(s - m_new)
            l_sc[h] = alpha * l_sc[h] + jnp.sum(p, axis=-1, keepdims=True)
            acc_sc[h] = alpha * acc_sc[h] + jnp.dot(
                p.astype(vh.dtype), vh, preferred_element_type=jnp.float32)
            m_sc[h] = m_new

        @pl.when(ki == pl.num_programs(2) - 1)
        def _finalize():
            outs = []
            for h in range(head):
                inv_l = pl.reciprocal(l_sc[h], approx=True)    # EUP slot
                outs.append(acc_sc[h] * inv_l)
            # one lane-dense store of (tq, head*d_v)
            o_ref[0] = jnp.concatenate(outs, axis=-1).astype(o_ref.dtype)

    return kernel


def pallas_flash_mha(q, k, v, mask_i8, *, head, d_k, d_v, tq=256, tkv=512):
    """q: (bs, len_q, head*d_k), k: (bs, len_k, head*d_k), v: (bs, len_k, head*d_v),
    mask_i8: None or (1 or bs, len_q, len_k) int8 -> (bs, len_q, head*d_v)."""
    bs, len_q, _ = q.shape
    len_k = k.shape[1]
    scale = 1.0 / math.sqrt(d_k)
    has_mask = mask_i8 is not None

    tq = _pick_tile(len_q, tq, 8)
    tkv = _pick_tile(len_k, tkv, 128)
    grid = (bs, len_q // tq, len_k // tkv)

    kernel = _make_flash_kernel(head=head, d_k=d_k, d_v=d_v, scale=scale,
                                has_mask=has_mask)

    in_specs = [
        pl.BlockSpec((1, tq, head * d_k), lambda b, qi, ki: (b, qi, 0)),
        pl.BlockSpec((1, tkv, head * d_k), lambda b, qi, ki: (b, ki, 0)),
        pl.BlockSpec((1, tkv, head * d_v), lambda b, qi, ki: (b, ki, 0)),
    ]
    inputs = [q, k, v]
    if has_mask:
        if mask_i8.shape[0] == 1:
            # batch-broadcast mask: reuse block 0, never re-DMA a per-batch copy
            in_specs.append(pl.BlockSpec((1, tq, tkv), lambda b, qi, ki: (0, qi, ki)))
        else:
            in_specs.append(pl.BlockSpec((1, tq, tkv), lambda b, qi, ki: (b, qi, ki)))
        inputs.append(mask_i8)
    # TODO(synk): for purely causal masks, build `keep` in-kernel from two
    # broadcasted_iota compares instead of DMAing a (len_q, len_k) mask at all.

    itemsize = jnp.dtype(q.dtype).itemsize
    needed = 2 * (tq * head * d_k + tkv * head * d_k + tkv * head * d_v
                  + tq * head * d_v) * itemsize
    if has_mask:
        needed += 2 * tq * tkv                       # int8 mask blocks
    needed += head * tq * (2 + d_v) * 4              # m/l/acc scratch (f32)

    # TODO(synk): when d_k and d_v are multiples of 128, switch to a
    # grid=(bs, head, ...) layout with per-head BlockSpecs to avoid the
    # sub-128 lane slices inside the head loop.
    return pl.pallas_call(
        kernel,
        out_shape=jax.ShapeDtypeStruct((bs, len_q, head * d_v), q.dtype),
        grid=grid,
        in_specs=in_specs,
        out_specs=pl.BlockSpec((1, tq, head * d_v), lambda b, qi, ki: (b, qi, 0)),
        scratch_shapes=[pltpu.VMEM((head, tq, 1), jnp.float32),
                        pltpu.VMEM((head, tq, 1), jnp.float32),
                        pltpu.VMEM((head, tq, d_v), jnp.float32)],
        compiler_params=pltpu.CompilerParams(
            dimension_semantics=("parallel", "parallel", "arbitrary"),
            vmem_limit_bytes=_vmem_limit_bytes(needed),
        ),
    )(*inputs)


# ----------------------------------------------------------------------------
# MultiHeadAttention forward (glue in plain JAX, hot paths in Pallas)
# ----------------------------------------------------------------------------
class MultiHeadAttentionPallas:
    def __init__(self, d_model, d_k, d_v, head, key, compute_dtype=jnp.bfloat16):
        self.d_model, self.d_k, self.d_v, self.head = d_model, d_k, d_v, head
        self.compute_dtype = compute_dtype
        k1, k2, k3, k4 = jax.random.split(key, 4)
        # f32 master weights (used by the reference), stored as
        # (in_features, out_features) so y = x @ W
        s = 1.0 / math.sqrt(d_model)
        self.w_v = jax.random.uniform(k1, (d_model, head * d_v), jnp.float32, -s, s)
        self.w_k = jax.random.uniform(k2, (d_model, head * d_k), jnp.float32, -s, s)
        self.w_q = jax.random.uniform(k3, (d_model, head * d_k), jnp.float32, -s, s)
        so = 1.0 / math.sqrt(head * d_v)
        self.w_o = jax.random.uniform(k4, (head * d_v, d_model), jnp.float32, -so, so)
        # MXU-native copies (bf16 on all TPU generations)
        self.w_qc = self.w_q.astype(compute_dtype)
        self.w_kc = self.w_k.astype(compute_dtype)
        self.w_vc = self.w_v.astype(compute_dtype)
        self.w_oc = self.w_o.astype(compute_dtype)

    def __call__(self, v, k, q, mask=None):
        bs, len_k, _ = k.shape
        len_q = q.shape[1]
        h, d_k, d_v, d_model = self.head, self.d_k, self.d_v, self.d_model
        cd = self.compute_dtype

        if (q is k) and (k is v):
            # self-attention: one fused kernel reads the input from HBM once
            # and emits q/k/v as three separate lane-dense outputs.
            x2d = q.reshape(bs * len_q, d_model).astype(cd)
            q_lin, k_lin, v_lin = pallas_fused_qkv(
                x2d, self.w_qc, self.w_kc, self.w_vc, out_dtype=cd)
            q_lin = q_lin.reshape(bs, len_q, h * d_k)
            k_lin = k_lin.reshape(bs, len_k, h * d_k)
            v_lin = v_lin.reshape(bs, len_k, h * d_v)
        else:
            q_lin = pallas_matmul(q.reshape(bs * len_q, d_model).astype(cd),
                                  self.w_qc, out_dtype=cd).reshape(bs, len_q, h * d_k)
            k_lin = pallas_matmul(k.reshape(bs * len_k, d_model).astype(cd),
                                  self.w_kc, out_dtype=cd).reshape(bs, len_k, h * d_k)
            v_lin = pallas_matmul(v.reshape(bs * len_k, d_model).astype(cd),
                                  self.w_vc, out_dtype=cd).reshape(bs, len_k, h * d_v)

        mask_i8 = None
        if mask is not None:
            m = jnp.asarray(mask)
            if m.ndim == 4:                         # (mb, 1, len_q, len_k)
                m = m[:, 0]
            mb = m.shape[0]                         # 1 (broadcast) or bs
            m = jnp.broadcast_to(m, (mb, len_q, len_k))
            mask_i8 = (m > 0).astype(jnp.int8)

        # (bs, len_q, head*d_v), heads folded in the lane dim — no transposes
        attn = pallas_flash_mha(q_lin, k_lin, v_lin, mask_i8,
                                head=h, d_k=d_k, d_v=d_v)

        out = pallas_matmul(attn.reshape(bs * len_q, h * d_v), self.w_oc,
                            out_dtype=jnp.float32)
        return out.reshape(bs, len_q, d_model)


# ----------------------------------------------------------------------------
# Pure-JAX reference (matmul operands rounded through the same compute dtype,
# so the check validates kernel logic rather than bf16 rounding).
# ----------------------------------------------------------------------------
def reference_forward(mha, v, k, q, mask=None):
    cd = mha.compute_dtype
    f32 = jnp.float32

    def mm(a, b):
        return jnp.dot(a.astype(cd), b.astype(cd), preferred_element_type=f32)

    bs, len_k, _ = k.shape
    len_q = q.shape[1]
    h, d_k, d_v = mha.head, mha.d_k, mha.d_v

    v_lin = mm(v, mha.w_v).reshape(bs, len_k, h, d_v).transpose(0, 2, 1, 3)
    k_lin = mm(k, mha.w_k).reshape(bs, len_k, h, d_k).transpose(0, 2, 1, 3)
    q_lin = mm(q, mha.w_q).reshape(bs, len_q, h, d_k).transpose(0, 2, 1, 3)
    # activations are stored in compute dtype between the Pallas kernels
    q_lin = q_lin.astype(cd).astype(f32)
    k_lin = k_lin.astype(cd).astype(f32)
    v_lin = v_lin.astype(cd).astype(f32)

    scores = jnp.einsum("bhqd,bhkd->bhqk", q_lin, k_lin) / math.sqrt(d_k)
    if mask is not None:
        scores = jnp.where(mask > 0, scores, -1e9)
    probs = jax.nn.softmax(scores, axis=-1)
    attn = jnp.einsum("bhqk,bhkd->bhqd", probs.astype(cd).astype(f32), v_lin)
    attn = attn.transpose(0, 2, 1, 3).reshape(bs, len_q, h * d_v)
    out = mm(attn, mha.w_o)
    return out.reshape(bs, len_q, mha.d_model)


if __name__ == "__main__":
    key = jax.random.PRNGKey(0)
    k_param, k_x, k_v, k_k, k_q = jax.random.split(key, 5)

    bs, seq, d_model, d_k, d_v, head = 2, 8, 32, 8, 8, 4
    mha = MultiHeadAttentionPallas(d_model, d_k, d_v, head, k_param,
                                   compute_dtype=jnp.bfloat16)

    # causal mask, batch-broadcast shape (1, 1, len_q, len_k): 1 = keep, 0 = masked
    mask = jnp.tril(jnp.ones((seq, seq), jnp.float32))[None, None, :, :]

    # bf16 MXU operands + online softmax + approximate EUP reciprocal: compare
    # against a precision-matched reference with a correspondingly loose tol.
    tol = dict(rtol=2e-2, atol=2e-2)

    # Path 1: self-attention with causal mask (fused QKV projection path)
    x = jax.random.normal(k_x, (bs, seq, d_model), jnp.float32)
    out1 = jax.block_until_ready(mha(x, x, x, mask))
    ref1 = reference_forward(mha, x, x, x, mask)
    np.testing.assert_allclose(np.asarray(out1, np.float32),
                               np.asarray(ref1, np.float32), **tol)

    # Path 2: distinct v/k/q tensors, no mask (general path, mask-free kernel)
    v = jax.random.normal(k_v, (bs, seq, d_model), jnp.float32)
    kk = jax.random.normal(k_k, (bs, seq, d_model), jnp.float32)
    q = jax.random.normal(k_q, (bs, seq, d_model), jnp.float32)
    out2 = jax.block_until_ready(mha(v, kk, q, None))
    ref2 = reference_forward(mha, v, kk, q, None)
    np.testing.assert_allclose(np.asarray(out2, np.float32),
                               np.asarray(ref2, np.float32), **tol)

    print("KERNEL_OK")
</pallas_src>

<mosaic_0001>
module attributes {stable_mosaic.version = 11 : i64} {
  func.func @_fused_qkv_kernel(%arg0: i32, %arg1: i32, %arg2: memref<16x32xbf16, #tpu.memory_space<vmem>>, %arg3: memref<32x32xbf16, #tpu.memory_space<vmem>>, %arg4: memref<32x32xbf16, #tpu.memory_space<vmem>>, %arg5: memref<32x32xbf16, #tpu.memory_space<vmem>>, %arg6: memref<16x32xbf16, #tpu.memory_space<vmem>>, %arg7: memref<16x32xbf16, #tpu.memory_space<vmem>>, %arg8: memref<16x32xbf16, #tpu.memory_space<vmem>>, %arg9: memref<16x32xf32, #tpu.memory_space<vmem>>, %arg10: memref<16x32xf32, #tpu.memory_space<vmem>>, %arg11: memref<16x32xf32, #tpu.memory_space<vmem>>) attributes {dimension_semantics = [#tpu.dimension_semantics<parallel>, #tpu.dimension_semantics<arbitrary>], iteration_bounds = array<i64: 1, 1>, scalar_prefetch = 0 : i64, scratch_operands = 3 : i64, tpu.core_type = #tpu.core_type<tc>, window_params = [{transform_indices = @transform_0, window_bounds = array<i64: 16, 32>}, {transform_indices = @transform_1, window_bounds = array<i64: 32, 32>}, {transform_indices = @transform_2, window_bounds = array<i64: 32, 32>}, {transform_indices = @transform_3, window_bounds = array<i64: 32, 32>}, {transform_indices = @transform_4, window_bounds = array<i64: 16, 32>}, {transform_indices = @transform_5, window_bounds = array<i64: 16, 32>}, {transform_indices = @transform_6, window_bounds = array<i64: 16, 32>}]} {
    %c0_i32 = arith.constant 0 : i32
    %0 = arith.cmpi eq, %arg1, %c0_i32 : i32
    %1 = arith.extui %0 : i1 to i32
    %c0_i32_0 = arith.constant 0 : i32
    %2 = arith.cmpi ne, %1, %c0_i32_0 : i32
    scf.if %2 {
      %cst_24 = arith.constant 0.000000e+00 : f32
      %22 = vector.broadcast %cst_24 : f32 to vector<16x32xf32>
      %c0_25 = arith.constant 0 : index
      %c0_26 = arith.constant 0 : index
      %23 = vector.load %arg9[%c0_25, %c0_26] : memref<16x32xf32, #tpu.memory_space<vmem>>, vector<16x32xf32>
      tpu.vector_store %arg9[%c0_25, %c0_26], %22 {strides = array<i32>} : memref<16x32xf32, #tpu.memory_space<vmem>>, vector<16x32xf32>,
      %cst_27 = arith.constant 0.000000e+00 : f32
      %24 = vector.broadcast %cst_27 : f32 to vector<16x32xf32>
      %c0_28 = arith.constant 0 : index
      %c0_29 = arith.constant 0 : index
      %25 = vector.load %arg10[%c0_28, %c0_29] : memref<16x32xf32, #tpu.memory_space<vmem>>, vector<16x32xf32>
      tpu.vector_store %arg10[%c0_28, %c0_29], %24 {strides = array<i32>} : memref<16x32xf32, #tpu.memory_space<vmem>>, vector<16x32xf32>,
      %cst_30 = arith.constant 0.000000e+00 : f32
      %26 = vector.broadcast %cst_30 : f32 to vector<16x32xf32>
      %c0_31 = arith.constant 0 : index
      %c0_32 = arith.constant 0 : index
      %27 = vector.load %arg11[%c0_31, %c0_32] : memref<16x32xf32, #tpu.memory_space<vmem>>, vector<16x32xf32>
      tpu.vector_store %arg11[%c0_31, %c0_32], %26 {strides = array<i32>} : memref<16x32xf32, #tpu.memory_space<vmem>>, vector<16x32xf32>,
    } else {
    }
    %c0 = arith.constant 0 : index
    %c0_1 = arith.constant 0 : index
    %3 = vector.load %arg2[%c0, %c0_1] : memref<16x32xbf16, #tpu.memory_space<vmem>>, vector<16x32xbf16>
    %c0_2 = arith.constant 0 : index
    %c0_3 = arith.constant 0 : index
    %4 = vector.load %arg9[%c0_2, %c0_3] : memref<16x32xf32, #tpu.memory_space<vmem>>, vector<16x32xf32>
    %c0_4 = arith.constant 0 : index
    %c0_5 = arith.constant 0 : index
    %5 = vector.load %arg3[%c0_4, %c0_5] : memref<32x32xbf16, #tpu.memory_space<vmem>>, vector<32x32xbf16>
    %cst = arith.constant dense<0.000000e+00> : vector<16x32xf32>
    %6 = tpu.matmul %3, %5, %cst {dimension_numbers = #tpu.dot_dimension_numbers<[1], [0], [0], [1], [0, 0, 1, 1], [], []>} : vector<16x32xbf16>, vector<32x32xbf16>, vector<16x32xf32> -> vector<16x32xf32>
    %7 = arith.addf %4, %6 : vector<16x32xf32>
    %c0_6 = arith.constant 0 : index
    %c0_7 = arith.constant 0 : index
    %8 = vector.load %arg9[%c0_6, %c0_7] : memref<16x32xf32, #tpu.memory_space<vmem>>, vector<16x32xf32>
    tpu.vector_store %arg9[%c0_6, %c0_7], %7 {strides = array<i32>} : memref<16x32xf32, #tpu.memory_space<vmem>>, vector<16x32xf32>,
    %c0_8 = arith.constant 0 : index
    %c0_9 = arith.constant 0 : index
    %9 = vector.load %arg10[%c0_8, %c0_9] : memref<16x32xf32, #tpu.memory_space<vmem>>, vector<16x32xf32>
    %c0_10 = arith.constant 0 : index
    %c0_11 = arith.constant 0 : index
    %10 = vector.load %arg4[%c0_10, %c0_11] : memref<32x32xbf16, #tpu.memory_space<vmem>>, vector<32x32xbf16>
    %cst_12 = arith.constant dense<0.000000e+00> : vector<16x32xf32>
    %11 = tpu.matmul %3, %10, %cst_12 {dimension_numbers = #tpu.dot_dimension_numbers<[1], [0], [0], [1], [0, 0, 1, 1], [], []>} : vector<16x32xbf16>, vector<32x32xbf16>, vector<16x32xf32> -> vector<16x32xf32>
    %12 = arith.addf %9, %11 : vector<16x32xf32>
    %c0_13 = arith.constant 0 : index
    %c0_14 = arith.constant 0 : index
    %13 = vector.load %arg10[%c0_13, %c0_14] : memref<16x32xf32, #tpu.memory_space<vmem>>, vector<16x32xf32>
    tpu.vector_store %arg10[%c0_13, %c0_14], %12 {strides = array<i32>} : memref<16x32xf32, #tpu.memory_space<vmem>>, vector<16x32xf32>,
    %c0_15 = arith.constant 0 : index
    %c0_16 = arith.constant 0 : index
    %14 = vector.load %arg11[%c0_15, %c0_16] : memref<16x32xf32, #tpu.memory_space<vmem>>, vector<16x32xf32>
    %c0_17 = arith.constant 0 : index
    %c0_18 = arith.constant 0 : index
    %15 = vector.load %arg5[%c0_17, %c0_18] : memref<32x32xbf16, #tpu.memory_space<vmem>>, vector<32x32xbf16>
    %cst_19 = arith.constant dense<0.000000e+00> : vector<16x32xf32>
    %16 = tpu.matmul %3, %15, %cst_19 {dimension_numbers = #tpu.dot_dimension_numbers<[1], [0], [0], [1], [0, 0, 1, 1], [], []>} : vector<16x32xbf16>, vector<32x32xbf16>, vector<16x32xf32> -> vector<16x32xf32>
    %17 = arith.addf %14, %16 : vector<16x32xf32>
    %c0_20 = arith.constant 0 : index
    %c0_21 = arith.constant 0 : index
    %18 = vector.load %arg11[%c0_20, %c0_21] : memref<16x32xf32, #tpu.memory_space<vmem>>, vector<16x32xf32>
    tpu.vector_store %arg11[%c0_20, %c0_21], %17 {strides = array<i32>} : memref<16x32xf32, #tpu.memory_space<vmem>>, vector<16x32xf32>,
    %c0_i32_22 = arith.constant 0 : i32
    %19 = arith.cmpi eq, %arg1, %c0_i32_22 : i32
    %20 = arith.extui %19 : i1 to i32
    %c0_i32_23 = arith.constant 0 : i32
    %21 = arith.cmpi ne, %20, %c0_i32_23 : i32
    scf.if %21 {
      %c0_24 = arith.constant 0 : index
      %c0_25 = arith.constant 0 : index
      %22 = vector.load %arg9[%c0_24, %c0_25] : memref<16x32xf32, #tpu.memory_space<vmem>>, vector<16x32xf32>
      %23 = arith.truncf %22 : vector<16x32xf32> to vector<16x32xbf16>
      %c0_26 = arith.constant 0 : index
      %c0_27 = arith.constant 0 : index
      %24 = vector.load %arg6[%c0_26, %c0_27] : memref<16x32xbf16, #tpu.memory_space<vmem>>, vector<16x32xbf16>
      tpu.vector_store %arg6[%c0_26, %c0_27], %23 {strides = array<i32>} : memref<16x32xbf16, #tpu.memory_space<vmem>>, vector<16x32xbf16>,
      %c0_28 = arith.constant 0 : index
      %c0_29 = arith.constant 0 : index
      %25 = vector.load %arg10[%c0_28, %c0_29] : memref<16x32xf32, #tpu.memory_space<vmem>>, vector<16x32xf32>
      %26 = arith.truncf %25 : vector<16x32xf32> to vector<16x32xbf16>
      %c0_30 = arith.constant 0 : index
      %c0_31 = arith.constant 0 : index
      %27 = vector.load %arg7[%c0_30, %c0_31] : memref<16x32xbf16, #tpu.memory_space<vmem>>, vector<16x32xbf16>
      tpu.vector_store %arg7[%c0_30, %c0_31], %26 {strides = array<i32>} : memref<16x32xbf16, #tpu.memory_space<vmem>>, vector<16x32xbf16>,
      %c0_32 = arith.constant 0 : index
      %c0_33 = arith.constant 0 : index
      %28 = vector.load %arg11[%c0_32, %c0_33] : memref<16x32xf32, #tpu.memory_space<vmem>>, vector<16x32xf32>
      %29 = arith.truncf %28 : vector<16x32xf32> to vector<16x32xbf16>
      %c0_34 = arith.constant 0 : index
      %c0_35 = arith.constant 0 : index
      %30 = vector.load %arg8[%c0_34, %c0_35] : memref<16x32xbf16, #tpu.memory_space<vmem>>, vector<16x32xbf16>
      tpu.vector_store %arg8[%c0_34, %c0_35], %29 {strides = array<i32>} : memref<16x32xbf16, #tpu.memory_space<vmem>>, vector<16x32xbf16>,
    } else {
    }
    return
  }
  func.func @transform_0(%arg0: i32, %arg1: i32) -> (i32, i32) {
    %c0_i32 = arith.constant 0 : i32
    return %arg0, %arg1 : i32, i32
  }
  func.func @transform_1(%arg0: i32, %arg1: i32) -> (i32, i32) {
    %c0_i32 = arith.constant 0 : i32
    %c0_i32_0 = arith.constant 0 : i32
    return %arg1, %c0_i32 : i32, i32
  }
  func.func @transform_2(%arg0: i32, %arg1: i32) -> (i32, i32) {
    %c0_i32 = arith.constant 0 : i32
    %c0_i32_0 = arith.constant 0 : i32
    return %arg1, %c0_i32 : i32, i32
  }
  func.func @transform_3(%arg0: i32, %arg1: i32) -> (i32, i32) {
    %c0_i32 = arith.constant 0 : i32
    %c0_i32_0 = arith.constant 0 : i32
    return %arg1, %c0_i32 : i32, i32
  }
  func.func @transform_4(%arg0: i32, %arg1: i32) -> (i32, i32) {
    %c0_i32 = arith.constant 0 : i32
    %c0_i32_0 = arith.constant 0 : i32
    return %arg0, %c0_i32 : i32, i32
  }
  func.func @transform_5(%arg0: i32, %arg1: i32) -> (i32, i32) {
    %c0_i32 = arith.constant 0 : i32
    %c0_i32_0 = arith.constant 0 : i32
    return %arg0, %c0_i32 : i32, i32
  }
  func.func @transform_6(%arg0: i32, %arg1: i32) -> (i32, i32) {
    %c0_i32 = arith.constant 0 : i32
    %c0_i32_0 = arith.constant 0 : i32
    return %arg0, %c0_i32 : i32, i32
  }
}

</mosaic_0001>

<bundles_post_ra>
// kernel: tpu_custom_call.1
= control target key start
LH: loop header
LB: loop body
LE: loop exit
PB: predicated region body
PF: predicated region fallthrough
CT: control target
= control target key end

     0   :  { %12 = vsyncpa [#allocation6], 0  ;;  %s812_s0 = inlined_call_operand.hbm [shape: bf16[16,32], index: 0, kind: input, shape index: {}]   ;;  %s813_s1 = inlined_call_operand.hbm [shape: bf16[32,32], index: 1, kind: input, shape index: {}]   ;;  %s814_s2 = inlined_call_operand.hbm [shape: bf16[32,32], index: 2, kind: input, shape index: {}]   ;;  %s815_s3 = inlined_call_operand.hbm [shape: bf16[32,32], index: 3, kind: input, shape index: {}]   ;;  %s816_s4 = inlined_call_operand.hbm [shape: bf16[16,32], index: 4, kind: output, shape index: {0}]   ;;  %s817_s5 = inlined_call_operand.hbm [shape: bf16[16,32], index: 5, kind: output, shape index: {1}]   ;;  %s818_s6 = inlined_call_operand.hbm [shape: bf16[16,32], index: 6, kind: output, shape index: {2}]  }
   0x1   :  { %13 = vsyncpa [#allocation9], 0 }
   0x2   :  { %14 = vsyncpa [#allocation12], 0 }
   0x3   :  { %15 = vsyncpa [#allocation7], 0 }
   0x4   :  { %16 = vsyncpa [#allocation15], 0  ;;  %s616_s21 = smov [#allocation8]   ;;  %s617_s23 = smov [#allocation5]  }
   0x5   :  { %s34_s22 = sshll.u32 %s616_s21, 4  ;;  %s22_s24 = sshll.u32 %s617_s23, 4  ;;  %s35_s22 = int_to_ptr.vmem [resolvable:$true] %s34_s22  ;;  %s662_s24 = int_to_ptr.vmem [resolvable:$true] %s22_s24 }
   0x6   :  { %s452_s27 = scalar_lea.hbm %s813_s1, 256 }
   0x7   :  { %p453_p0 = scmp.ne.s32.totalorder %s813_s1, %s452_s27  ;;  %p456_p1 = scmp.lt.u32.totalorder %s452_s27, %s813_s1 }
   0x9   :  { %p458_p2 = pnand %p456_p1, %p453_p0 }
   0xb   :  { %461 = shalt.err (!%p458_p2)
}
   0xc   :  { %s462_s8 = scalar_lea.vmem %s35_s22, 256  ;;  %p467_p4 = scmp.lt.s32.totalorder %s35_s22, %s35_s22 }
   0xd   :  { %p463_p3 = scmp.ne.s32.totalorder %s35_s22, %s462_s8  ;;  %p468_p5 = scmp.lt.s32.totalorder %s462_s8, %s462_s8 }
   0xf   :  { %p469_p6 = por %p468_p5, %p467_p4 }
  0x11   :  { %p470_p7 = pnand %p469_p6, %p463_p3 }
  0x13   :  { %473 = shalt.err (!%p470_p7)
}
  0x14   :  { %s618_s9 = smov 64   ;;  %s619_s10 = smov 4  }
  0x15   :  { %40 = dma.hbm_to_vmem [thread:$0]  %s813_s1, 256, %s35_s22, [#allocation9], %s618_s9, %s618_s9, %s619_s10  }
  0x16   :  { %s474_s15 = scalar_lea.hbm %s812_s0, 128 }
  0x17   :  { %p475_p8 = scmp.ne.s32.totalorder %s812_s0, %s474_s15  ;;  %p478_p9 = scmp.lt.u32.totalorder %s474_s15, %s812_s0 }
  0x19   :  { %p480_p10 = pnand %p478_p9, %p475_p8 }
  0x1b   :  { %483 = shalt.err (!%p480_p10)
}
  0x1c   :  { %s484_s20 = scalar_lea.vmem %s662_s24, 128  ;;  %p489_p12 = scmp.lt.s32.totalorder %s662_s24, %s662_s24 }
  0x1d   :  { %p485_p11 = scmp.ne.s32.totalorder %s662_s24, %s484_s20  ;;  %p490_p13 = scmp.lt.s32.totalorder %s484_s20, %s484_s20 }
  0x1f   :  { %p491_p0 = por %p490_p13, %p489_p12 }
  0x21   :  { %p492_p1 = pnand %p491_p0, %p485_p11 }
  0x23   :  { %495 = shalt.err (!%p492_p1)
}
  0x24   :  { %28 = dma.hbm_to_vmem [thread:$0]  %s812_s0, 128, %s662_s24, [#allocation6], %s618_s9, %s618_s9, %s619_s10  }
  0x25   :  { %s620_s22 = smov [#allocation10]   ;;  %s621_s25 = smov [#allocation11]  }
  0x26   :  { %s46_s23 = sshll.u32 %s620_s22, 4  ;;  %s58_s26 = sshll.u32 %s621_s25, 4  ;;  %s47_s23 = int_to_ptr.vmem [resolvable:$true] %s46_s23  ;;  %s699_s26 = int_to_ptr.vmem [resolvable:$true] %s58_s26 }
  0x27   :  { %s496_s29 = scalar_lea.hbm %s814_s2, 256 }
  0x28   :  { %p497_p2 = scmp.ne.s32.totalorder %s814_s2, %s496_s29  ;;  %p500_p3 = scmp.lt.u32.totalorder %s496_s29, %s814_s2 }
  0x2a   :  { %p502_p4 = pnand %p500_p3, %p497_p2 }
  0x2c   :  { %505 = shalt.err (!%p502_p4)
}
  0x2d   :  { %s506_s0 = scalar_lea.vmem %s47_s23, 256  ;;  %p511_p6 = scmp.lt.s32.totalorder %s47_s23, %s47_s23 }
  0x2e   :  { %p507_p5 = scmp.ne.s32.totalorder %s47_s23, %s506_s0  ;;  %p512_p7 = scmp.lt.s32.totalorder %s506_s0, %s506_s0 }
  0x30   :  { %p513_p8 = por %p512_p7, %p511_p6 }
  0x32   :  { %p514_p9 = pnand %p513_p8, %p507_p5 }
  0x34   :  { %517 = shalt.err (!%p514_p9)
}
  0x35   :  { %52 = dma.hbm_to_vmem [thread:$0]  %s814_s2, 256, %s47_s23, [#allocation9], %s618_s9, %s618_s9, %s619_s10  }
  0x36   :  { %s518_s15 = scalar_lea.hbm %s815_s3, 256 }
  0x37   :  { %p519_p10 = scmp.ne.s32.totalorder %s815_s3, %s518_s15  ;;  %p522_p11 = scmp.lt.u32.totalorder %s518_s15, %s815_s3 }
  0x39   :  { %p524_p12 = pnand %p522_p11, %p519_p10 }
  0x3b   :  { %527 = shalt.err (!%p524_p12)
}
  0x3c   :  { %s528_s20 = scalar_lea.vmem %s699_s26, 256  ;;  %p533_p0 = scmp.lt.s32.totalorder %s699_s26, %s699_s26 }
  0x3d   :  { %p529_p13 = scmp.ne.s32.totalorder %s699_s26, %s528_s20  ;;  %p534_p1 = scmp.lt.s32.totalorder %s528_s20, %s528_s20 }
  0x3f   :  { %p535_p2 = por %p534_p1, %p533_p0 }
  0x41   :  { %p536_p3 = pnand %p535_p2, %p529_p13 }
  0x43   :  { %539 = shalt.err (!%p536_p3)
}
  0x44   :  { %64 = dma.hbm_to_vmem [thread:$0]  %s815_s3, 256, %s699_s26, [#allocation12], %s618_s9, %s618_s9, %s619_s10  }
  0x45   :  { %606 = dma.done.wait [#allocation6], 128  }
  0x46   :  { %607 = vsyncadd [#allocation6], 4294967168 }
  0x47   :  { %608 = dma.done.wait [#allocation9], 512  }
  0x48   :  { %609 = vsyncadd [#allocation9], 4294966784 }
  0x49   :  { %610 = dma.done.wait [#allocation12], 256  }
  0x4a   :  { %611 = vsyncadd [#allocation12], 4294967040  ;;  %vm82_vm0 = vcmask 261120   ;;  %v622_v0 = vmov 0.0   ;;  %vm623_vm1 = vmmov 0   ;;  %v445_v1 = vld [vmem:[#allocation8] sm:$0xff]  }
  0x4b   :  { %410 = vmatprep.subr.bf16.mxu0 %v622_v0  ;;  %418 = vmatprep.subr.bf16.mxu1 %v622_v0  ;;  %83 = vst.msk [vmem:[#allocation2] sm:$0xff] %vm82_vm0, %v622_v0  ;;  %84 = vst.msk [vmem:[#allocation2 + $0x8] sm:$0xff] %vm82_vm0, %v622_v0  ;;  %v446_v2 = vld [vmem:[#allocation8 + $0x8] sm:$0xff]   ;;  %v447_v3 = vld [vmem:[#allocation10] sm:$0xff]   ;;  %vm302_vm2 = vcmask 257024   ;;  %s624_s3 = smov [#allocation13]  }
  0x4c   :  { %85 = vst.msk [vmem:[#allocation3] sm:$0xff] %vm82_vm0, %v622_v0  ;;  %86 = vst.msk [vmem:[#allocation3 + $0x8] sm:$0xff] %vm82_vm0, %v622_v0  ;;  %414 = vmatprep.mubr.msk.bf16.mxu0 %vm623_vm1, %v622_v0  ;;  %422 = vmatprep.mubr.msk.bf16.mxu1 %vm623_vm1, %v622_v0  ;;  %v448_v4 = vld [vmem:[#allocation5] sm:$0xff]   ;;  %v449_v6 = vld [vmem:[#allocation11] sm:$0xff]   ;;  %s334_s21 = sshll.u32 %s624_s3, 4  ;;  %s625_s22 = smov [#allocation14]   ;;  %s335_s21 = int_to_ptr.vmem [resolvable:$true] %s334_s21 }
  0x4d   :  { %87 = vst.msk [vmem:[#allocation4] sm:$0xff] %vm82_vm0, %v622_v0  ;;  %88 = vst.msk [vmem:[#allocation4 + $0x8] sm:$0xff] %vm82_vm0, %v622_v0  ;;  %411 = vmatpush3.bf16.msra.mxu0 %v445_v1  ;;  %419 = vmatpush3.bf16.msra.mxu1 %v447_v3  ;;  %v450_v5 = vld [vmem:[#allocation10 + $0x8] sm:$0xff]   ;;  %v451_v7 = vld [vmem:[#allocation11 + $0x8] sm:$0xff]   ;;  %s346_s23 = sshll.u32 %s625_s22, 4  ;;  %s540_s25 = scalar_lea.vmem %s335_s21, 128  ;;  %s756_s23 = int_to_ptr.vmem [resolvable:$true] %s346_s23 }
  0x4e   :  { %412 = vmatprep.subr.bf16.mxu0 %v622_v0  ;;  %420 = vmatprep.subr.bf16.mxu1 %v622_v0  ;;  %p541_p4 = scmp.ne.s32.totalorder %s335_s21, %s540_s25  ;;  %p545_p5 = scmp.lt.s32.totalorder %s335_s21, %s335_s21 }
  0x4f   :  { %p546_p6 = scmp.lt.s32.totalorder %s540_s25, %s540_s25 }
  0x51   :  { %413 = vmatpush3.bf16.msra.mxu0 %v446_v2  ;;  %421 = vmatpush3.bf16.msra.mxu1 %v450_v5  ;;  %p547_p7 = por %p546_p6, %p545_p5 }
  0x52   :  { %426 = vmatprep.subr.bf16.mxu0 %v622_v0  ;;  %v91_v8 = vld [vmem:[#allocation2] sm:$0xff]  ;;  %v92_v10 = vld [vmem:[#allocation2 + $0x8] sm:$0xff] }
  0x53   :  { %v163_v11 = vld [vmem:[#allocation3] sm:$0xff]  ;;  %v164_v16 = vld [vmem:[#allocation3 + $0x8] sm:$0xff]  ;;  %p548_p8 = pnand %p547_p7, %p541_p4 }
  0x54   :  { %415 = vmatmul.mubr.msk.bf16.vlgmr.msra.gmra.mrb[0].mxu0 %vm82_vm0, %v448_v4  ;;  %423 = vmatmul.mubr.msk.bf16.vlgmr.msra.gmra.mrb[0].mxu1 %vm82_vm0, %v448_v4  ;;  %v226_v24 = vld [vmem:[#allocation4] sm:$0xff]  ;;  %v227_v26 = vld [vmem:[#allocation4 + $0x8] sm:$0xff] }
  0x55   :  { %427 = vmatpush3.bf16.msra.mxu0 %v449_v6  ;;  %430 = vmatprep.mubr.msk.bf16.mxu0 %vm623_vm1, %v622_v0 }
  0x56   :  { %428 = vmatprep.subr.bf16.mxu0 %v622_v0 }
  0x59   :  { %429 = vmatpush3.bf16.msra.mxu0 %v451_v7 }
  0x5c   :  { %431 = vmatmul.mubr.msk.bf16.vlgmr.msra.gmra.mrb[4].mxu0 %vm82_vm0, %v448_v4 }
 0x127   :  { %v152_v9 = vpop.f32.mrb[0].mxu0  ;;  %v215_v15 = vpop.f32.mrb[0].mxu1 }
 0x128   :  { %v159_v12 = vadd.f32 %v152_v9, %v91_v8  ;;  %v416_v13 = vpop.f32.mrb[1].mxu0  ;;  %v222_v19 = vadd.f32 %v215_v15, %v163_v11  ;;  %v424_v20 = vpop.f32.mrb[1].mxu1 }
 0x129   :  { %v155_v14 = vpop.f32.mrb[2].mxu0  ;;  %v218_v21 = vpop.f32.mrb[2].mxu1 }
 0x12a   :  { %161 = vst.msk [vmem:[#allocation2] sm:$0xff] %vm82_vm0, %v159_v12  ;;  %v160_v17 = vadd.f32 %v155_v14, %v92_v10  ;;  %v417_v18 = vpop.f32.mrb[3].mxu0  ;;  %224 = vst.msk [vmem:[#allocation3] sm:$0xff] %vm82_vm0, %v222_v19  ;;  %v223_v22 = vadd.f32 %v218_v21, %v164_v16  ;;  %v425_v23 = vpop.f32.mrb[3].mxu1 }
 0x12c   :  { %162 = vst.msk [vmem:[#allocation2 + $0x8] sm:$0xff] %vm82_vm0, %v160_v17  ;;  %225 = vst.msk [vmem:[#allocation3 + $0x8] sm:$0xff] %vm82_vm0, %v223_v22 }
 0x12f   :  { %v278_v25 = vpop.f32.mrb[4].mxu0 }
 0x130   :  { %v285_v27 = vadd.f32 %v278_v25, %v226_v24  ;;  %v432_v28 = vpop.f32.mrb[5].mxu0 }
 0x131   :  { %v281_v29 = vpop.f32.mrb[6].mxu0  ;;  %v292_v30 = vld [vmem:[#allocation2] sm:$0xff]  ;;  %v305_v34 = vld [vmem:[#allocation3] sm:$0xff] }
 0x132   :  { %287 = vst.msk [vmem:[#allocation4] sm:$0xff] %vm82_vm0, %v285_v27  ;;  %v286_v31 = vadd.f32 %v281_v29, %v227_v26  ;;  %v433_v32 = vpop.f32.mrb[7].mxu0  ;;  %v395_v33 = vpack.c.bf16 %v292_v30, %v292_v30  ;;  %v397_v36 = vpack.c.bf16 %v305_v34, %v305_v34 }
 0x133   :  { %v293_v35 = vld [vmem:[#allocation2 + $0x8] sm:$0xff]  ;;  %v306_v38 = vld [vmem:[#allocation3 + $0x8] sm:$0xff] }
 0x134   :  { %288 = vst.msk [vmem:[#allocation4 + $0x8] sm:$0xff] %vm82_vm0, %v286_v31  ;;  %v396_v37 = vpack.c.bf16 %v293_v35, %v293_v35  ;;  %v398_v39 = vpack.c.bf16 %v306_v38, %v306_v38 }
 0x135   :  { %303 = vst.msk [vmem:[#allocation13] sm:$0xf] %vm302_vm2, %v395_v33  ;;  %315 = vst.msk [vmem:[#allocation14] sm:$0xf] %vm302_vm2, %v397_v36 }
 0x136   :  { %304 = vst.msk [vmem:[#allocation13 + $0x4] sm:$0xf] %vm302_vm2, %v396_v37 }
 0x137   :  { %551 = shalt.err (!%p548_p8)
}
 0x138   :  { %s552_s28 = scalar_lea.hbm %s816_s4, 128 }
 0x139   :  { %p553_p9 = scmp.ne.s32.totalorder %s816_s4, %s552_s28  ;;  %p556_p10 = scmp.lt.u32.totalorder %s552_s28, %s816_s4 }
 0x13b   :  { %p558_p11 = pnand %p556_p10, %p553_p9 }
 0x13d   :  { %561 = shalt.err (!%p558_p11)
}
 0x13e   :  { %340 = dma.vmem_to_hbm [thread:$0]  %s335_s21, 128, %s816_s4, [#allocation7], %s618_s9, %s618_s9, %s619_s10   ;;  %316 = vst.msk [vmem:[#allocation14 + $0x4] sm:$0xf] %vm302_vm2, %v398_v39 }
 0x13f   :  { %s626_s24 = smov [#allocation16]   ;;  %s562_s13 = scalar_lea.vmem %s756_s23, 128 }
 0x140   :  { %s358_s12 = sshll.u32 %s626_s24, 4  ;;  %p563_p12 = scmp.ne.s32.totalorder %s756_s23, %s562_s13  ;;  %s359_s12 = int_to_ptr.vmem [resolvable:$true] %s358_s12 }
 0x141   :  { %p567_p13 = scmp.lt.s32.totalorder %s756_s23, %s756_s23  ;;  %p568_p0 = scmp.lt.s32.totalorder %s562_s13, %s562_s13 }
 0x143   :  { %p569_p1 = por %p568_p0, %p567_p13 }
 0x145   :  { %p570_p2 = pnand %p569_p1, %p563_p12 }
 0x147   :  { %573 = shalt.err (!%p570_p2)
}
 0x148   :  { %s574_s16 = scalar_lea.hbm %s817_s5, 128 }
 0x149   :  { %p575_p3 = scmp.ne.s32.totalorder %s817_s5, %s574_s16  ;;  %p578_p4 = scmp.lt.u32.totalorder %s574_s16, %s817_s5 }
 0x14b   :  { %p580_p5 = pnand %p578_p4, %p575_p3 }
 0x14d   :  { %583 = shalt.err (!%p580_p5)
}
 0x14e   :  { %352 = dma.vmem_to_hbm [thread:$0]  %s756_s23, 128, %s817_s5, [#allocation15], %s618_s9, %s618_s9, %s619_s10   ;;  %v317_v40 = vld [vmem:[#allocation4] sm:$0xff]  ;;  %v318_v42 = vld [vmem:[#allocation4 + $0x8] sm:$0xff] }
 0x14f   :  { %v399_v41 = vpack.c.bf16 %v317_v40, %v317_v40  ;;  %v400_v43 = vpack.c.bf16 %v318_v42, %v318_v42  ;;  %s584_s1 = scalar_lea.vmem %s359_s12, 128  ;;  %p589_p7 = scmp.lt.s32.totalorder %s359_s12, %s359_s12 }
 0x150   :  { %p585_p6 = scmp.ne.s32.totalorder %s359_s12, %s584_s1  ;;  %p590_p8 = scmp.lt.s32.totalorder %s584_s1, %s584_s1 }
 0x151   :  { %327 = vst.msk [vmem:[#allocation16] sm:$0xf] %vm302_vm2, %v399_v41  ;;  %328 = vst.msk [vmem:[#allocation16 + $0x4] sm:$0xf] %vm302_vm2, %v400_v43 }
 0x152   :  { %p591_p9 = por %p590_p8, %p589_p7 }
 0x154   :  { %p592_p10 = pnand %p591_p9, %p585_p6 }
 0x156   :  { %595 = shalt.err (!%p592_p10)
}
 0x157   :  { %s596_s5 = scalar_lea.hbm %s818_s6, 128 }
 0x158   :  { %p597_p11 = scmp.ne.s32.totalorder %s818_s6, %s596_s5  ;;  %p600_p12 = scmp.lt.u32.totalorder %s596_s5, %s818_s6 }
 0x15a   :  { %p602_p13 = pnand %p600_p12, %p597_p11 }
 0x15c   :  { %605 = shalt.err (!%p602_p13)
}
 0x15d   :  { %364 = dma.vmem_to_hbm [thread:$0]  %s359_s12, 128, %s818_s6, [#allocation15], %s618_s9, %s618_s9, %s619_s10  }
 0x15e   :  { %612 = dma.done.wait [#allocation7], 128  }
 0x15f   :  { %613 = vsyncadd [#allocation7], 4294967168 }
 0x160   :  { %614 = dma.done.wait [#allocation15], 256  }
 0x161   :  { %615 = vsyncadd [#allocation15], 4294967040 }
 0x162   :  { %374 = vsyncpa [#allocation6], 1 }
 0x163   :  { %375 = vsyncpa [#allocation9], 1 }
 0x164   :  { %376 = vsyncpa [#allocation12], 1 }
 0x165   :  { %377 = vsyncpa [#allocation7], 1 }
 0x166   :  { %378 = vsyncpa [#allocation15], 1 }

</bundles_post_ra>
